<compile_context>
chip_gen: v7x
topology: tpu7x:2x2x1
jax: 0.10.0
libtpu: 0.0.40
codegen_flags: <defaults>
</compile_context>

<pallas_src>
import functools

import jax
import jax.numpy as jnp
import numpy as np
from jax.experimental import pallas as pl
from jax.experimental.pallas import tpu as pltpu


def _round_up(v, m):
    return (v + m - 1) // m * m


def _pick_tile_n(n, h, w):
    """Batch (lane) tile size, multiple of 128, sized for the smallest VMEM
    generation (v7x: 64 MiB physical / 32 MiB scoped) including the 2x input
    double-buffering and in-kernel f32 temporaries."""
    budget = 4 * 1024 * 1024                                   # bytes per input buffer
    per_lane = 4 * (h * w + 6 * (h - 1) * (w - 1) + 8)         # x + slabs + temps
    cap = max(128, budget // per_lane // 128 * 128)
    return min(_round_up(max(n, 1), 128), cap)


def _conv_pool_kernel(w_ref, x_ref, o_ref, *, H, W, Hp, Wp):
    """Fused 2x2 valid conv (1->3 ch, no bias) + 2x2/2 max-pool for one batch tile.

    w_ref: SMEM (12,)              f32   -- flattened (3,1,2,2) OIHW weights
    x_ref: VMEM (H, W, TILE_N)     f32   -- batch on the lane axis
    o_ref: VMEM (R_pad, TILE_N)    f32   -- rows = flat (c, p, q), zero-padded to 8k
    """
    Hc, Wc = H - 1, W - 1
    tn = x_ref.shape[-1]
    x = x_ref[...]                                             # (H, W, Tn)

    # Hoisted shifted slabs, shared by all 3 output channels.
    x00 = x[0:Hc, 0:Wc, :]
    x01 = x[0:Hc, 1:W, :]
    x10 = x[1:H, 0:Wc, :]
    x11 = x[1:H, 1:W, :]

    rows = []
    for c in range(3):
        w0 = w_ref[4 * c + 0]
        w1 = w_ref[4 * c + 1]
        w2 = w_ref[4 * c + 2]
        w3 = w_ref[4 * c + 3]
        # conv output channel c: y[i,j,n] = sum_{di,dj} w[c,di,dj] * x[i+di,j+dj,n]
        y = w0 * x00 + w1 * x01 + w2 * x10 + w3 * x11          # (Hc, Wc, Tn)

        # ---- 2x2 / stride-2 max pool, floor mode, vectorized over (Hp, Tn) ----
        # horizontal adjacent-pair max (unit-stride sublane slices only)
        yh = jnp.maximum(y[:, 0:Wc - 1, :], y[:, 1:Wc, :])     # (Hc, Wc-1, Tn)
        # vertical pairing via a leading-(major)-dim split reshape (layout no-op)
        yh2 = yh[0:2 * Hp].reshape(Hp, 2, Wc - 1, tn)
        yv = jnp.maximum(yh2[:, 0], yh2[:, 1])                 # (Hp, Wc-1, Tn)
        # keep every second column (Wp is a tiny static -> unrolled)
        qcols = [yv[:, 2 * q, :] for q in range(Wp)]           # each (Hp, Tn)

        if Wp == 1:
            rows.append(qcols[0])                              # flat (p) order
        else:
            # flat (c, p, q) order needs interleaving; Hp, Wp are tiny statics.
            for p in range(Hp):
                for q in range(Wp):
                    rows.append(qcols[q][p:p + 1, :])          # (1, Tn)

    out = jnp.concatenate(rows, axis=0)                        # (3*Hp*Wp, Tn)
    rpad = o_ref.shape[0] - out.shape[0]
    if rpad:
        out = jnp.concatenate([out, jnp.zeros((rpad, tn), out.dtype)], axis=0)
    o_ref[...] = out                                           # one dense, lane-dense store


def empty_model_forward(x_nchw, w_oihw, *, tile_n=None):
    """x_nchw: (N, 1, H, W) f32; w_oihw: (3, 1, 2, 2) f32."""
    N, Cin, H, W = x_nchw.shape
    assert Cin == 1
    Hc, Wc = H - 1, W - 1
    Hp, Wp = Hc // 2, Wc // 2
    assert Hp >= 1 and Wp >= 1, "input too small for conv(2) + pool(2)"

    R = 3 * Hp * Wp
    R_pad = _round_up(R, 8)

    if tile_n is None:
        tile_n = _pick_tile_n(N, H, W)
    N_pad = _round_up(N, tile_n)

    # Single cheap 2-D transpose to put batch on the lane axis; the reshapes
    # around it are free.  (Keeping activations in HWN end-to-end would remove
    # it entirely, but the module interface is NCHW.)
    x2d = x_nchw.astype(jnp.float32).reshape(N, H * W).T       # (H*W, N)
    if N_pad != N:
        x2d = jnp.pad(x2d, ((0, 0), (0, N_pad - N)))
    x_hwn = x2d.reshape(H, W, N_pad)

    w_flat = w_oihw.astype(jnp.float32).reshape(12)            # OIHW flat: c*4+di*2+dj

    kernel = functools.partial(_conv_pool_kernel, H=H, W=W, Hp=Hp, Wp=Wp)
    o = pl.pallas_call(
        kernel,
        out_shape=jax.ShapeDtypeStruct((R_pad, N_pad), jnp.float32),
        grid=(N_pad // tile_n,),
        in_specs=[
            pl.BlockSpec(memory_space=pltpu.MemorySpace.SMEM),          # weights (12,)
            pl.BlockSpec((H, W, tile_n), lambda i: (0, 0, i)),          # batch tile
        ],
        out_specs=pl.BlockSpec((R_pad, tile_n), lambda i: (0, i)),
        compiler_params=pltpu.CompilerParams(
            dimension_semantics=("parallel",),                          # 2-TC split on v7x
        ),
    )(w_flat, x_hwn)

    out2d = o[:R, :N].T                                        # (N, 3*Hp*Wp), (c,p,q) order
    # torch: squeeze(dim=1) on each (N, Hp, Wp) indicator, then cat(dim=1)
    if Hp == 1:
        return out2d                                           # (N, 3*Wp)
    return out2d.reshape(N, 3 * Hp, Wp)                        # (N, 3*Hp, Wp)


def _reference_forward(x_nchw, w_oihw):
    """Pure-JAX reference mirroring the PyTorch forward semantics."""
    y = jax.lax.conv_general_dilated(
        x_nchw, w_oihw, window_strides=(1, 1), padding="VALID",
        dimension_numbers=("NCHW", "OIHW", "NCHW"))
    pooled = jax.lax.reduce_window(
        y, -jnp.inf, jax.lax.max,
        window_dimensions=(1, 1, 2, 2), window_strides=(1, 1, 2, 2),
        padding="VALID")
    N = x_nchw.shape[0]
    Hp, Wp = pooled.shape[2], pooled.shape[3]
    if Hp == 1:
        return pooled.reshape(N, 3 * Wp)
    return pooled.reshape(N, 3 * Hp, Wp)


if __name__ == "__main__":
    key = jax.random.PRNGKey(0)
    kx, kw = jax.random.split(key)

    # Small shapes consistent with the module: batch=2, 1 channel, 4x4 spatial.
    N, H, W = 2, 4, 4
    x = jax.random.normal(kx, (N, 1, H, W), dtype=jnp.float32)

    # Deterministic Conv2d(1, 3, 2, bias=False) weights: uniform in
    # [-1/sqrt(fan_in), 1/sqrt(fan_in)] with fan_in = 1*2*2 = 4.
    bound = 1.0 / np.sqrt(4.0)
    w = jax.random.uniform(kw, (3, 1, 2, 2), dtype=jnp.float32,
                           minval=-bound, maxval=bound)

    out = jax.block_until_ready(empty_model_forward(x, w))
    ref = jax.block_until_ready(_reference_forward(x, w))

    assert out.shape == ref.shape, (out.shape, ref.shape)
    assert np.allclose(np.asarray(out), np.asarray(ref), atol=1e-5, rtol=1e-5)
    print("KERNEL_OK")
</pallas_src>

<mosaic_0001>
module attributes {stable_mosaic.version = 11 : i64} {
  func.func @_conv_pool_kernel(%arg0: i32, %arg1: memref<12xf32, #tpu.memory_space<smem>>, %arg2: memref<4x4x128xf32, #tpu.memory_space<vmem>>, %arg3: memref<8x128xf32, #tpu.memory_space<vmem>>) attributes {dimension_semantics = [#tpu.dimension_semantics<parallel>], iteration_bounds = array<i64: 1>, scalar_prefetch = 0 : i64, scratch_operands = 0 : i64, tpu.core_type = #tpu.core_type<tc>, window_params = [{transform_indices = @transform_0, window_bounds = array<i64: 12>}, {transform_indices = @transform_1, window_bounds = array<i64: 4, 4, 128>}, {transform_indices = @transform_2, window_bounds = array<i64: 8, 128>}]} {
    %c0 = arith.constant 0 : index
    %c0_0 = arith.constant 0 : index
    %c0_1 = arith.constant 0 : index
    %0 = vector.load %arg2[%c0, %c0_0, %c0_1] : memref<4x4x128xf32, #tpu.memory_space<vmem>>, vector<4x4x128xf32>
    %1 = vector.extract_strided_slice %0 {offsets = [0, 0, 0], sizes = [3, 3, 128], strides = [1, 1, 1]} : vector<4x4x128xf32> to vector<3x3x128xf32>
    %2 = vector.extract_strided_slice %0 {offsets = [0, 1, 0], sizes = [3, 3, 128], strides = [1, 1, 1]} : vector<4x4x128xf32> to vector<3x3x128xf32>
    %3 = vector.extract_strided_slice %0 {offsets = [1, 0, 0], sizes = [3, 3, 128], strides = [1, 1, 1]} : vector<4x4x128xf32> to vector<3x3x128xf32>
    %4 = vector.extract_strided_slice %0 {offsets = [1, 1, 0], sizes = [3, 3, 128], strides = [1, 1, 1]} : vector<4x4x128xf32> to vector<3x3x128xf32>
    %c0_2 = arith.constant 0 : index
    %5 = memref.load %arg1[%c0_2] : memref<12xf32, #tpu.memory_space<smem>>
    %c1 = arith.constant 1 : index
    %6 = memref.load %arg1[%c1] : memref<12xf32, #tpu.memory_space<smem>>
    %c2 = arith.constant 2 : index
    %7 = memref.load %arg1[%c2] : memref<12xf32, #tpu.memory_space<smem>>
    %c3 = arith.constant 3 : index
    %8 = memref.load %arg1[%c3] : memref<12xf32, #tpu.memory_space<smem>>
    %9 = vector.broadcast %5 : f32 to vector<3x3x128xf32>
    %10 = arith.mulf %9, %1 : vector<3x3x128xf32>
    %11 = vector.broadcast %6 : f32 to vector<3x3x128xf32>
    %12 = arith.mulf %11, %2 : vector<3x3x128xf32>
    %13 = arith.addf %10, %12 : vector<3x3x128xf32>
    %14 = vector.broadcast %7 : f32 to vector<3x3x128xf32>
    %15 = arith.mulf %14, %3 : vector<3x3x128xf32>
    %16 = arith.addf %13, %15 : vector<3x3x128xf32>
    %17 = vector.broadcast %8 : f32 to vector<3x3x128xf32>
    %18 = arith.mulf %17, %4 : vector<3x3x128xf32>
    %19 = arith.addf %16, %18 : vector<3x3x128xf32>
    %20 = vector.extract_strided_slice %19 {offsets = [0, 0, 0], sizes = [3, 2, 128], strides = [1, 1, 1]} : vector<3x3x128xf32> to vector<3x2x128xf32>
    %21 = vector.extract_strided_slice %19 {offsets = [0, 1, 0], sizes = [3, 2, 128], strides = [1, 1, 1]} : vector<3x3x128xf32> to vector<3x2x128xf32>
    %22 = arith.maximumf %20, %21 : vector<3x2x128xf32>
    %23 = vector.extract_strided_slice %22 {offsets = [0, 0, 0], sizes = [2, 2, 128], strides = [1, 1, 1]} : vector<3x2x128xf32> to vector<2x2x128xf32>
    %24 = vector.shape_cast %23 : vector<2x2x128xf32> to vector<1x2x2x128xf32>
    %25 = vector.extract_strided_slice %24 {offsets = [0, 0, 0, 0], sizes = [1, 1, 2, 128], strides = [1, 1, 1, 1]} : vector<1x2x2x128xf32> to vector<1x1x2x128xf32>
    %26 = vector.shape_cast %25 : vector<1x1x2x128xf32> to vector<1x2x128xf32>
    %27 = vector.extract_strided_slice %24 {offsets = [0, 1, 0, 0], sizes = [1, 1, 2, 128], strides = [1, 1, 1, 1]} : vector<1x2x2x128xf32> to vector<1x1x2x128xf32>
    %28 = vector.shape_cast %27 : vector<1x1x2x128xf32> to vector<1x2x128xf32>
    %29 = arith.maximumf %26, %28 : vector<1x2x128xf32>
    %30 = vector.extract_strided_slice %29 {offsets = [0, 0, 0], sizes = [1, 1, 128], strides = [1, 1, 1]} : vector<1x2x128xf32> to vector<1x1x128xf32>
    %31 = vector.shape_cast %30 : vector<1x1x128xf32> to vector<1x128xf32>
    %c4 = arith.constant 4 : index
    %32 = memref.load %arg1[%c4] : memref<12xf32, #tpu.memory_space<smem>>
    %c5 = arith.constant 5 : index
    %33 = memref.load %arg1[%c5] : memref<12xf32, #tpu.memory_space<smem>>
    %c6 = arith.constant 6 : index
    %34 = memref.load %arg1[%c6] : memref<12xf32, #tpu.memory_space<smem>>
    %c7 = arith.constant 7 : index
    %35 = memref.load %arg1[%c7] : memref<12xf32, #tpu.memory_space<smem>>
    %36 = vector.broadcast %32 : f32 to vector<3x3x128xf32>
    %37 = arith.mulf %36, %1 : vector<3x3x128xf32>
    %38 = vector.broadcast %33 : f32 to vector<3x3x128xf32>
    %39 = arith.mulf %38, %2 : vector<3x3x128xf32>
    %40 = arith.addf %37, %39 : vector<3x3x128xf32>
    %41 = vector.broadcast %34 : f32 to vector<3x3x128xf32>
    %42 = arith.mulf %41, %3 : vector<3x3x128xf32>
    %43 = arith.addf %40, %42 : vector<3x3x128xf32>
    %44 = vector.broadcast %35 : f32 to vector<3x3x128xf32>
    %45 = arith.mulf %44, %4 : vector<3x3x128xf32>
    %46 = arith.addf %43, %45 : vector<3x3x128xf32>
    %47 = vector.extract_strided_slice %46 {offsets = [0, 0, 0], sizes = [3, 2, 128], strides = [1, 1, 1]} : vector<3x3x128xf32> to vector<3x2x128xf32>
    %48 = vector.extract_strided_slice %46 {offsets = [0, 1, 0], sizes = [3, 2, 128], strides = [1, 1, 1]} : vector<3x3x128xf32> to vector<3x2x128xf32>
    %49 = arith.maximumf %47, %48 : vector<3x2x128xf32>
    %50 = vector.extract_strided_slice %49 {offsets = [0, 0, 0], sizes = [2, 2, 128], strides = [1, 1, 1]} : vector<3x2x128xf32> to vector<2x2x128xf32>
    %51 = vector.shape_cast %50 : vector<2x2x128xf32> to vector<1x2x2x128xf32>
    %52 = vector.extract_strided_slice %51 {offsets = [0, 0, 0, 0], sizes = [1, 1, 2, 128], strides = [1, 1, 1, 1]} : vector<1x2x2x128xf32> to vector<1x1x2x128xf32>
    %53 = vector.shape_cast %52 : vector<1x1x2x128xf32> to vector<1x2x128xf32>
    %54 = vector.extract_strided_slice %51 {offsets = [0, 1, 0, 0], sizes = [1, 1, 2, 128], strides = [1, 1, 1, 1]} : vector<1x2x2x128xf32> to vector<1x1x2x128xf32>
    %55 = vector.shape_cast %54 : vector<1x1x2x128xf32> to vector<1x2x128xf32>
    %56 = arith.maximumf %53, %55 : vector<1x2x128xf32>
    %57 = vector.extract_strided_slice %56 {offsets = [0, 0, 0], sizes = [1, 1, 128], strides = [1, 1, 1]} : vector<1x2x128xf32> to vector<1x1x128xf32>
    %58 = vector.shape_cast %57 : vector<1x1x128xf32> to vector<1x128xf32>
    %c8 = arith.constant 8 : index
    %59 = memref.load %arg1[%c8] : memref<12xf32, #tpu.memory_space<smem>>
    %c9 = arith.constant 9 : index
    %60 = memref.load %arg1[%c9] : memref<12xf32, #tpu.memory_space<smem>>
    %c10 = arith.constant 10 : index
    %61 = memref.load %arg1[%c10] : memref<12xf32, #tpu.memory_space<smem>>
    %c11 = arith.constant 11 : index
    %62 = memref.load %arg1[%c11] : memref<12xf32, #tpu.memory_space<smem>>
    %63 = vector.broadcast %59 : f32 to vector<3x3x128xf32>
    %64 = arith.mulf %63, %1 : vector<3x3x128xf32>
    %65 = vector.broadcast %60 : f32 to vector<3x3x128xf32>
    %66 = arith.mulf %65, %2 : vector<3x3x128xf32>
    %67 = arith.addf %64, %66 : vector<3x3x128xf32>
    %68 = vector.broadcast %61 : f32 to vector<3x3x128xf32>
    %69 = arith.mulf %68, %3 : vector<3x3x128xf32>
    %70 = arith.addf %67, %69 : vector<3x3x128xf32>
    %71 = vector.broadcast %62 : f32 to vector<3x3x128xf32>
    %72 = arith.mulf %71, %4 : vector<3x3x128xf32>
    %73 = arith.addf %70, %72 : vector<3x3x128xf32>
    %74 = vector.extract_strided_slice %73 {offsets = [0, 0, 0], sizes = [3, 2, 128], strides = [1, 1, 1]} : vector<3x3x128xf32> to vector<3x2x128xf32>
    %75 = vector.extract_strided_slice %73 {offsets = [0, 1, 0], sizes = [3, 2, 128], strides = [1, 1, 1]} : vector<3x3x128xf32> to vector<3x2x128xf32>
    %76 = arith.maximumf %74, %75 : vector<3x2x128xf32>
    %77 = vector.extract_strided_slice %76 {offsets = [0, 0, 0], sizes = [2, 2, 128], strides = [1, 1, 1]} : vector<3x2x128xf32> to vector<2x2x128xf32>
    %78 = vector.shape_cast %77 : vector<2x2x128xf32> to vector<1x2x2x128xf32>
    %79 = vector.extract_strided_slice %78 {offsets = [0, 0, 0, 0], sizes = [1, 1, 2, 128], strides = [1, 1, 1, 1]} : vector<1x2x2x128xf32> to vector<1x1x2x128xf32>
    %80 = vector.shape_cast %79 : vector<1x1x2x128xf32> to vector<1x2x128xf32>
    %81 = vector.extract_strided_slice %78 {offsets = [0, 1, 0, 0], sizes = [1, 1, 2, 128], strides = [1, 1, 1, 1]} : vector<1x2x2x128xf32> to vector<1x1x2x128xf32>
    %82 = vector.shape_cast %81 : vector<1x1x2x128xf32> to vector<1x2x128xf32>
    %83 = arith.maximumf %80, %82 : vector<1x2x128xf32>
    %84 = vector.extract_strided_slice %83 {offsets = [0, 0, 0], sizes = [1, 1, 128], strides = [1, 1, 1]} : vector<1x2x128xf32> to vector<1x1x128xf32>
    %85 = vector.shape_cast %84 : vector<1x1x128xf32> to vector<1x128xf32>
    %86 = tpu.concatenate %31, %58, %85 in 0 : vector<1x128xf32>, vector<1x128xf32>, vector<1x128xf32> -> vector<3x128xf32>
    %cst = arith.constant 0.000000e+00 : f32
    %87 = vector.broadcast %cst : f32 to vector<5x128xf32>
    %88 = tpu.concatenate %86, %87 in 0 : vector<3x128xf32>, vector<5x128xf32> -> vector<8x128xf32>
    %c0_3 = arith.constant 0 : index
    %c0_4 = arith.constant 0 : index
    %89 = vector.load %arg3[%c0_3, %c0_4] : memref<8x128xf32, #tpu.memory_space<vmem>>, vector<8x128xf32>
    tpu.vector_store %arg3[%c0_3, %c0_4], %88 {strides = array<i32>} : memref<8x128xf32, #tpu.memory_space<vmem>>, vector<8x128xf32>,
    return
  }
  func.func @transform_0(%arg0: i32) -> i32 {
    %c0_i32 = arith.constant 0 : i32
    %c0_i32_0 = arith.constant 0 : i32
    return %c0_i32 : i32
  }
  func.func @transform_1(%arg0: i32) -> (i32, i32, i32) {
    %c0_i32 = arith.constant 0 : i32
    %c0_i32_0 = arith.constant 0 : i32
    %c0_i32_1 = arith.constant 0 : i32
    return %c0_i32, %c0_i32_0, %arg0 : i32, i32, i32
  }
  func.func @transform_2(%arg0: i32) -> (i32, i32) {
    %c0_i32 = arith.constant 0 : i32
    %c0_i32_0 = arith.constant 0 : i32
    return %c0_i32, %arg0 : i32, i32
  }
}

</mosaic_0001>

<bundles_post_ra>
// kernel: tpu_custom_call.1
= control target key start
LH: loop header
LB: loop body
LE: loop exit
PB: predicated region body
PF: predicated region fallthrough
CT: control target
= control target key end

     0   :  { %7 = vsyncpa [#allocation5], 0  ;;  %s370_s0 = inlined_call_operand.hbm [shape: f32[12], index: 0, kind: input, shape index: {}]   ;;  %s371_s1 = inlined_call_operand.hbm [shape: f32[4,4,128], index: 1, kind: input, shape index: {}]   ;;  %s372_s2 = inlined_call_operand.hbm [shape: f32[8,128], index: 2, kind: output, shape index: {}]  }
   0x1   :  { %8 = vsyncpa [#allocation3], 0 }
   0x2   :  { %9 = vsyncpa [#allocation4], 0  ;;  %s214_s11 = scalar_lea.hbm %s370_s0, 16 }
   0x3   :  { %p215_p0 = scmp.ne.s32.totalorder %s370_s0, %s214_s11  ;;  %p218_p1 = scmp.lt.u32.totalorder %s214_s11, %s370_s0 }
   0x5   :  { %p220_p2 = pnand %p218_p1, %p215_p0 }
   0x7   :  { %223 = shalt.err (!%p220_p2)
}
   0x8   :  { %s274_s16 = smov [#allocation2]   ;;  %s275_s19 = smov [#allocation6]  }
   0x9   :  { %17 = dma.hbm_to_smem %s370_s0, 16, %s274_s16, [#allocation5]  }
   0xa   :  { %s23_s20 = sshll.u32 %s275_s19, 4  ;;  %s224_s23 = scalar_lea.hbm %s371_s1, 256  ;;  %s24_s20 = int_to_ptr.vmem [resolvable:$true] %s23_s20 }
   0xb   :  { %p225_p3 = scmp.ne.s32.totalorder %s371_s1, %s224_s23  ;;  %p228_p4 = scmp.lt.u32.totalorder %s224_s23, %s371_s1 }
   0xd   :  { %p230_p5 = pnand %p228_p4, %p225_p3 }
   0xf   :  { %233 = shalt.err (!%p230_p5)
}
  0x10   :  { %s234_s28 = scalar_lea.vmem %s24_s20, 256  ;;  %p239_p7 = scmp.lt.s32.totalorder %s24_s20, %s24_s20 }
  0x11   :  { %p235_p6 = scmp.ne.s32.totalorder %s24_s20, %s234_s28  ;;  %p240_p8 = scmp.lt.s32.totalorder %s234_s28, %s234_s28 }
  0x13   :  { %p241_p9 = por %p240_p8, %p239_p7 }
  0x15   :  { %p242_p10 = pnand %p241_p9, %p235_p6 }
  0x17   :  { %245 = shalt.err (!%p242_p10)
}
  0x18   :  { %s276_s0 = smov 64   ;;  %s277_s29 = smov 4  }
  0x19   :  { %29 = dma.hbm_to_vmem [thread:$0]  %s371_s1, 256, %s24_s20, [#allocation3], %s276_s0, %s276_s0, %s277_s29  }
  0x1a   :  { %268 = dma.done.wait [#allocation5], 16  }
  0x1b   :  { %269 = vsyncadd [#allocation5], 4294967280 }
  0x1c   :  { %270 = dma.done.wait [#allocation3], 256  }
  0x1d   :  { %271 = vsyncadd [#allocation3], 4294967040 }
  0x1e   :  { %36 = sfence }
  0x1f   :  { %s40_s4 = sld [smem:[#allocation2]]  ;;  %s198_s5 = sld [smem:[#allocation2 + $0x1]]  ;;  %v37_v0 = vld [vmem:[#allocation6] sm:$0xf]  ;;  %v322_v1 = vld [vmem:[#allocation6 + $0x4] sm:$0xf] }
  0x20   :  { %s199_s6 = sld [smem:[#allocation2 + $0x2]]  ;;  %s200_s7 = sld [smem:[#allocation2 + $0x3]]  ;;  %v326_v8 = vld [vmem:[#allocation6 + $0x8] sm:$0xf]  ;;  %vm175_vm0 = vcmask 1040384   ;;  %vm177_vm1 = vcmask 1041408  }
  0x21   :  { %s201_s8 = sld [smem:[#allocation2 + $0x4]]  ;;  %s202_s9 = sld [smem:[#allocation2 + $0x5]]  ;;  %vm179_vm2 = vcmask 1042432  }
  0x22   :  { %s318_s10 = sld [smem:[#allocation2 + $0x6]]  ;;  %s320_s11 = sld [smem:[#allocation2 + $0x7]] }
  0x23   :  { %s328_s1 = sld [smem:[#allocation2 + $0x8]]  ;;  %s330_s12 = sld [smem:[#allocation2 + $0x9]] }
  0x24   :  { %s340_s13 = sld [smem:[#allocation2 + $0xa]]  ;;  %s342_s14 = sld [smem:[#allocation2 + $0xb]] }
  0x25   :  { %v44_v2 = vstv %s40_s4  ;;  %v47_v3 = vstv %s198_s5  ;;  %s278_s15 = smov [#allocation7]  }
  0x26   :  { %v45_v4 = vmul.f32 %v44_v2, %v37_v0  ;;  %v46_v5 = vmul.f32 %v44_v2, %v322_v1  ;;  %v48_v6 = vmul.f32 %v47_v3, %v37_v0  ;;  %v49_v7 = vmul.f32 %v47_v3, %v322_v1  ;;  %s188_s16 = sshll.u32 %s278_s15, 4  ;;  %s189_s16 = int_to_ptr.vmem [resolvable:$true] %s188_s16 }
  0x27   :  { %v58_v9 = vstv %s199_s6  ;;  %v63_v10 = vstv %s200_s7  ;;  %v87_v11 = vstv %s201_s8  ;;  %v90_v12 = vstv %s202_s9  ;;  %s246_s17 = scalar_lea.vmem %s189_s16, 128  ;;  %p251_p12 = scmp.lt.s32.totalorder %s189_s16, %s189_s16 }
  0x28   :  { %v52_v13 = vrot.slane %v48_v6, 1  ;;  %v53_v14 = vrot.slane %v49_v7, 1  ;;  %v59_v15 = vmul.f32 %v58_v9, %v322_v1  ;;  %v60_v16 = vmul.f32 %v58_v9, %v326_v8  ;;  %p247_p11 = scmp.ne.s32.totalorder %s189_s16, %s246_s17  ;;  %p252_p13 = scmp.lt.s32.totalorder %s246_s17, %s246_s17 }
  0x29   :  { %v64_v17 = vmul.f32 %v63_v10, %v322_v1  ;;  %v65_v18 = vmul.f32 %v63_v10, %v326_v8  ;;  %v88_v19 = vmul.f32 %v87_v11, %v37_v0  ;;  %v89_v20 = vmul.f32 %v87_v11, %v322_v1 }
  0x2a   :  { %v56_v21 = vadd.f32 %v52_v13, %v45_v4  ;;  %v57_v22 = vadd.f32 %v53_v14, %v46_v5  ;;  %v91_v23 = vmul.f32 %v90_v12, %v37_v0  ;;  %v92_v24 = vmul.f32 %v90_v12, %v322_v1  ;;  %p253_p0 = por %p252_p13, %p251_p12 }
  0x2b   :  { %v68_v25 = vrot.slane %v64_v17, 1  ;;  %v69_v26 = vrot.slane %v65_v18, 1  ;;  %v101_v27 = vstv %s318_s10  ;;  %v106_v28 = vstv %s320_s11 }
  0x2c   :  { %v61_v29 = vadd.f32 %v59_v15, %v56_v21  ;;  %v62_v30 = vadd.f32 %v60_v16, %v57_v22  ;;  %v95_v31 = vrot.slane %v91_v23, 1  ;;  %v96_v32 = vrot.slane %v92_v24, 1  ;;  %p254_p1 = pnand %p253_p0, %p247_p11 }
  0x2d   :  { %v102_v33 = vmul.f32 %v101_v27, %v322_v1  ;;  %v103_v34 = vmul.f32 %v101_v27, %v326_v8  ;;  %v107_v35 = vmul.f32 %v106_v28, %v322_v1  ;;  %v108_v36 = vmul.f32 %v106_v28, %v326_v8 }
  0x2e   :  { %v72_v37 = vadd.f32 %v68_v25, %v61_v29  ;;  %v99_v38 = vadd.f32 %v95_v31, %v88_v19  ;;  %v100_v39 = vadd.f32 %v96_v32, %v89_v20  ;;  %v130_v42 = vstv %s328_s1 }
  0x2f   :  { %v111_v40 = vrot.slane %v107_v35, 1  ;;  %v112_v41 = vrot.slane %v108_v36, 1  ;;  %v133_v43 = vstv %s330_s12  ;;  %v73_v44 = vadd.f32 %v69_v26, %v62_v30 }
  0x30   :  { %v104_v45 = vadd.f32 %v102_v33, %v99_v38  ;;  %v105_v46 = vadd.f32 %v103_v34, %v100_v39  ;;  %v131_v47 = vmul.f32 %v130_v42, %v37_v0  ;;  %v132_v48 = vmul.f32 %v130_v42, %v322_v1 }
  0x31   :  { %v134_v49 = vmul.f32 %v133_v43, %v37_v0  ;;  %v135_v50 = vmul.f32 %v133_v43, %v322_v1  ;;  %v76_v51 = vrot.slane %v72_v37, 1  ;;  %v144_v56 = vstv %s340_s13 }
  0x32   :  { %v115_v52 = vadd.f32 %v111_v40, %v104_v45  ;;  %v116_v53 = vadd.f32 %v112_v41, %v105_v46  ;;  %v149_v57 = vstv %s342_s14  ;;  %v77_v58 = vrot.slane %v73_v44, 1 }
  0x33   :  { %v138_v54 = vrot.slane %v134_v49, 1  ;;  %v139_v55 = vrot.slane %v135_v50, 1  ;;  %v145_v61 = vmul.f32 %v144_v56, %v322_v1  ;;  %v146_v2 = vmul.f32 %v144_v56, %v326_v8 }
  0x34   :  { %v119_v59 = vrot.slane %v115_v52, 1  ;;  %v120_v60 = vrot.slane %v116_v53, 1  ;;  %v150_v0 = vmul.f32 %v149_v57, %v322_v1  ;;  %v151_v5 = vmul.f32 %v149_v57, %v326_v8 }
  0x35   :  { %v142_v62 = vadd.f32 %v138_v54, %v131_v47  ;;  %v143_v63 = vadd.f32 %v139_v55, %v132_v48  ;;  %v80_v11 = vmax.f32 %v72_v37, %v76_v51  ;;  %v81_v12 = vmax.f32 %v73_v44, %v77_v58 }
  0x36   :  { %v123_v3 = vmax.f32 %v115_v52, %v119_v59  ;;  %v124_v4 = vmax.f32 %v116_v53, %v120_v60  ;;  %v154_v9 = vrot.slane %v150_v0, 1  ;;  %v155_v10 = vrot.slane %v151_v5, 1 }
  0x37   :  { %v147_v6 = vadd.f32 %v145_v61, %v142_v62  ;;  %v148_v7 = vadd.f32 %v146_v2, %v143_v63  ;;  %v82_v18 = vmax.f32 %v80_v11, %v81_v12 }
  0x38   :  { %v125_v13 = vmax.f32 %v123_v3, %v124_v4 }
  0x39   :  { %v158_v14 = vadd.f32 %v154_v9, %v147_v6  ;;  %v159_v15 = vadd.f32 %v155_v10, %v148_v7 }
  0x3a   :  { %v170_v20 = vrot.slane %v125_v13, 7 }
  0x3b   :  { %v162_v16 = vrot.slane %v158_v14, 1  ;;  %v163_v17 = vrot.slane %v159_v15, 1 }
  0x3c   :  { %v176_v22 = vsel %vm175_vm0, %v82_v18, %v170_v20 }
  0x3d   :  { %v166_v19 = vmax.f32 %v158_v14, %v162_v16  ;;  %v167_v21 = vmax.f32 %v159_v15, %v163_v17 }
  0x3f   :  { %v168_v1 = vmax.f32 %v166_v19, %v167_v21 }
  0x41   :  { %v173_v8 = vrot.slane %v168_v1, 6 }
  0x43   :  { %v178_v23 = vsel %vm177_vm1, %v176_v22, %v173_v8 }
  0x44   :  { %v180_v24 = vsel %vm179_vm2, %v178_v23, 0.0 }
  0x45   :  { %181 = vst [vmem:[#allocation7] sm:$0xff] %v180_v24 }
  0x46   :  { %257 = shalt.err (!%p254_p1)
}
  0x47   :  { %s258_s20 = scalar_lea.hbm %s372_s2, 128 }
  0x48   :  { %p259_p2 = scmp.ne.s32.totalorder %s372_s2, %s258_s20  ;;  %p262_p3 = scmp.lt.u32.totalorder %s258_s20, %s372_s2 }
  0x4a   :  { %p264_p4 = pnand %p262_p3, %p259_p2 }
  0x4c   :  { %267 = shalt.err (!%p264_p4)
}
  0x4d   :  { %191 = dma.vmem_to_hbm [thread:$0]  %s189_s16, 128, %s372_s2, [#allocation4]  }
  0x4e   :  { %272 = dma.done.wait [#allocation4], 128  }
  0x4f   :  { %273 = vsyncadd [#allocation4], 4294967168 }
  0x50   :  { %195 = vsyncpa [#allocation3], 1 }
  0x51   :  { %196 = vsyncpa [#allocation4], 1 }
  0x52   :  { %197 = vsyncpa [#allocation5], 1 }

</bundles_post_ra>
